<compile_context>
chip_gen: v7x
topology: tpu7x:2x2x1
jax: 0.10.0
libtpu: 0.0.40
codegen_flags: <defaults>
</compile_context>

<pallas_src>
import functools

import jax
import jax.numpy as jnp
from jax import lax
from jax.experimental import pallas as pl
from jax.experimental.pallas import tpu as pltpu

# ----- small, module-consistent config -----
N_VOCAB = 10      # n      : embedding vocab size
K = 4             # k      : number of (count, value) pairs -> ctx has 2K rows
NEMBED = 32       # nembed : embedding dim
NHID = 32         # nhid   : encoder hidden dim
BATCH = 8         # B      : ctx.size(1)
INIT_RANGE = 0.1  # init_range for uniform parameter init (as in init_cont)


def _round_up(x, m):
    return ((x + m - 1) // m) * m


def _encode_body(cnt_idx_ref, val_idx_ref, cnt_tab_ref, val_tab_ref,
                 w_ref, b_ref, out_ref, *, k, n_vocab, skip_values, mxu_bf16):
    """Fused gather + multiply + Linear + tanh for one batch tile."""
    tb, nhid_pad = out_ref.shape
    kv = k * n_vocab

    # Lane iota over the flattened (k * vocab) one-hot axis, shared by both
    # gathers. Index columns arrive pre-offset by kk * n_vocab, so the one-hot
    # of each row has exactly K ones (one per vocab block).
    lane_iota = lax.broadcasted_iota(jnp.int32, (tb, kv), 1)

    def one_hot(flat_idx):                              # (TB, K) int32 -> (TB, K*V) f32
        hit = lane_iota == flat_idx[:, 0:1]
        for kk in range(1, k):
            hit = jnp.logical_or(hit, lane_iota == flat_idx[:, kk:kk + 1])
        return hit.astype(jnp.float32)

    # Gather all K count embeddings in ONE matmul against the block-diagonal
    # table: (TB, K*V) @ (K*V, K*E) -> (TB, K*E). Exact (0/1 weights).
    h = jnp.dot(one_hot(cnt_idx_ref[...]), cnt_tab_ref[...],
                preferred_element_type=jnp.float32)
    if not skip_values:
        v = jnp.dot(one_hot(val_idx_ref[...]), val_tab_ref[...],
                    preferred_element_type=jnp.float32)
        h = h * v                                       # VPU elementwise

    # Encoder: single matmul with a full K*E contraction dim.
    w = w_ref[...]
    if mxu_bf16:                                        # v6e / v7x fast MXU path
        h = h.astype(jnp.bfloat16)
        w = w.astype(jnp.bfloat16)
    acc = jnp.dot(h, w, preferred_element_type=jnp.float32)

    out_ref[...] = jnp.tanh(acc + b_ref[...])           # bias broadcast + tanh (EUP)


def _make_kernel(*, k, n_vocab, skip_values, mxu_bf16):
    if skip_values:
        def kernel(cnt_idx_ref, cnt_tab_ref, w_ref, b_ref, out_ref):
            _encode_body(cnt_idx_ref, None, cnt_tab_ref, None,
                         w_ref, b_ref, out_ref, k=k, n_vocab=n_vocab,
                         skip_values=True, mxu_bf16=mxu_bf16)
    else:
        def kernel(cnt_idx_ref, val_idx_ref, cnt_tab_ref, val_tab_ref,
                   w_ref, b_ref, out_ref):
            _encode_body(cnt_idx_ref, val_idx_ref, cnt_tab_ref, val_tab_ref,
                         w_ref, b_ref, out_ref, k=k, n_vocab=n_vocab,
                         skip_values=False, mxu_bf16=mxu_bf16)
    return kernel


@functools.partial(jax.jit, static_argnames=("skip_values", "mxu_bf16"))
def mlp_context_encoder(ctx, cnt_table, val_table, w, b, *,
                        skip_values=False, mxu_bf16=False):
    """ctx: (2K, B) int indices. Returns (B, NHID) float32."""
    two_k, batch = ctx.shape
    k = two_k // 2
    n_vocab, nembed = cnt_table.shape
    ke, nhid = w.shape
    assert ke == k * nembed
    kv = k * n_vocab

    # Tiny XLA-side index prep only: strided de-interleave + transpose of the
    # int32 index matrix and addition of per-pair block offsets (kk * V) so the
    # kernel builds one combined (TB, K*V) one-hot. No f32 gather/transpose/
    # reshape ever happens in XLA.
    offs = (jnp.arange(k, dtype=jnp.int32) * n_vocab)[None, :]
    cnt_idx = ctx[0::2, :].T.astype(jnp.int32) + offs            # (B, K)
    val_idx = None if skip_values else ctx[1::2, :].T.astype(jnp.int32) + offs

    # Block-diagonal gather tables (K*V, K*E): layout plumbing, tiny (40x128).
    eye_k = jnp.eye(k, dtype=cnt_table.dtype)
    cnt_tab_blk = jnp.kron(eye_k, cnt_table)
    val_tab_blk = None if skip_values else jnp.kron(eye_k, val_table)

    # Batch tiling: big tiles amortize per-step overhead; grid axis is
    # "parallel" so v7x can shard batch blocks across its two TensorCores.
    tb_max = 512
    b_pad = _round_up(batch, 8)
    tb = min(b_pad, tb_max)
    b_pad = _round_up(b_pad, tb)
    if b_pad != batch:
        pad = b_pad - batch                                      # pad with index 0
        cnt_idx = jnp.pad(cnt_idx, ((0, pad), (0, 0)))           # padded rows sliced off
        if not skip_values:
            val_idx = jnp.pad(val_idx, ((0, pad), (0, 0)))

    # Lane-dense output: pad NHID up to a multiple of 128 with zero columns so
    # the kernel issues full unmasked vector stores; slice back afterwards.
    nhid_pad = _round_up(nhid, 128)
    if nhid_pad != nhid:
        w = jnp.pad(w, ((0, 0), (0, nhid_pad - nhid)))
        b = jnp.pad(b, ((0, nhid_pad - nhid),))
    bias2d = b.reshape(1, nhid_pad)

    kernel = _make_kernel(k=k, n_vocab=n_vocab,
                          skip_values=skip_values, mxu_bf16=mxu_bf16)

    idx_spec = pl.BlockSpec((tb, k), lambda i: (i, 0))           # per batch block
    tab_spec = pl.BlockSpec((kv, ke), lambda i: (0, 0))          # VMEM-resident
    w_spec = pl.BlockSpec((ke, nhid_pad), lambda i: (0, 0))      # VMEM-resident
    b_spec = pl.BlockSpec((1, nhid_pad), lambda i: (0, 0))       # VMEM-resident
    out_spec = pl.BlockSpec((tb, nhid_pad), lambda i: (i, 0))

    if skip_values:
        in_specs = [idx_spec, tab_spec, w_spec, b_spec]
        args = (cnt_idx, cnt_tab_blk, w, bias2d)
    else:
        in_specs = [idx_spec, idx_spec, tab_spec, tab_spec, w_spec, b_spec]
        args = (cnt_idx, val_idx, cnt_tab_blk, val_tab_blk, w, bias2d)

    out = pl.pallas_call(
        kernel,
        out_shape=jax.ShapeDtypeStruct((b_pad, nhid_pad), jnp.float32),
        grid_spec=pltpu.PrefetchScalarGridSpec(
            num_scalar_prefetch=0,
            grid=(b_pad // tb,),
            in_specs=in_specs,
            out_specs=out_spec,
        ),
        compiler_params=pltpu.CompilerParams(
            dimension_semantics=("parallel",),
        ),
    )(*args)
    return out[:batch, :nhid]


if __name__ == "__main__":
    key = jax.random.PRNGKey(0)
    k_ctx, k_cnt, k_val, k_w, k_b = jax.random.split(key, 5)

    # ctx: (2K, B) integer indices into the vocab, interleaved count/value rows.
    ctx = jax.random.randint(k_ctx, (2 * K, BATCH), 0, N_VOCAB, dtype=jnp.int32)

    # Deterministic synthetic parameters (init_cont: uniform(-init_range, init_range)).
    cnt_table = jax.random.uniform(k_cnt, (N_VOCAB, NEMBED), jnp.float32,
                                   -INIT_RANGE, INIT_RANGE)
    val_table = jax.random.uniform(k_val, (N_VOCAB, NEMBED), jnp.float32,
                                   -INIT_RANGE, INIT_RANGE)
    # Linear(K*NEMBED, NHID): stored as (in_features, nhid) for x @ W.
    w = jax.random.uniform(k_w, (K * NEMBED, NHID), jnp.float32,
                           -INIT_RANGE, INIT_RANGE)
    b = jax.random.uniform(k_b, (NHID,), jnp.float32, -INIT_RANGE, INIT_RANGE)

    # Pure-JAX reference of the PyTorch forward.
    def ref_forward(skip_values):
        cnt_emb = jnp.take(cnt_table, ctx[0::2, :], axis=0)            # (K, B, E)
        if skip_values:
            h = cnt_emb
        else:
            val_emb = jnp.take(val_table, ctx[1::2, :], axis=0)
            h = cnt_emb * val_emb
        h = jnp.transpose(h, (1, 0, 2)).reshape(BATCH, -1)
        return jnp.tanh(h @ w + b)

    # Default f32 path.
    out = mlp_context_encoder(ctx, cnt_table, val_table, w, b)
    jax.block_until_ready(out)
    assert out.shape == (BATCH, NHID) and out.dtype == jnp.float32
    assert jnp.allclose(out, ref_forward(False), atol=1e-5, rtol=1e-5)

    # skip_values trace-time specialization (no val inputs, no multiply).
    out_skip = mlp_context_encoder(ctx, cnt_table, val_table, w, b,
                                   skip_values=True)
    jax.block_until_ready(out_skip)
    assert jnp.allclose(out_skip, ref_forward(True), atol=1e-5, rtol=1e-5)

    # bf16 MXU path (v6e / v7x fast path) -- looser tolerance as expected.
    out_bf16 = mlp_context_encoder(ctx, cnt_table, val_table, w, b,
                                   mxu_bf16=True)
    jax.block_until_ready(out_bf16)
    assert jnp.allclose(out_bf16, ref_forward(False), atol=5e-3, rtol=5e-3)

    print("KERNEL_OK")
</pallas_src>

<mosaic_0001>
module attributes {stable_mosaic.version = 11 : i64} {
  func.func @kernel(%arg0: i32, %arg1: memref<8x4xi32, #tpu.memory_space<vmem>>, %arg2: memref<8x4xi32, #tpu.memory_space<vmem>>, %arg3: memref<40x128xf32, #tpu.memory_space<vmem>>, %arg4: memref<40x128xf32, #tpu.memory_space<vmem>>, %arg5: memref<128x128xf32, #tpu.memory_space<vmem>>, %arg6: memref<1x128xf32, #tpu.memory_space<vmem>>, %arg7: memref<8x128xf32, #tpu.memory_space<vmem>>) attributes {dimension_semantics = [#tpu.dimension_semantics<parallel>], iteration_bounds = array<i64: 1>, scalar_prefetch = 0 : i64, scratch_operands = 0 : i64, tpu.core_type = #tpu.core_type<tc>, window_params = [{transform_indices = @transform_0, window_bounds = array<i64: 8, 4>}, {transform_indices = @transform_1, window_bounds = array<i64: 8, 4>}, {pipeline_mode = #tpu.pipeline_mode<synchronous>, transform_indices = @transform_2, window_bounds = array<i64: 40, 128>}, {pipeline_mode = #tpu.pipeline_mode<synchronous>, transform_indices = @transform_3, window_bounds = array<i64: 40, 128>}, {pipeline_mode = #tpu.pipeline_mode<synchronous>, transform_indices = @transform_4, window_bounds = array<i64: 128, 128>}, {pipeline_mode = #tpu.pipeline_mode<synchronous>, transform_indices = @transform_5, window_bounds = array<i64: 1, 128>}, {transform_indices = @transform_6, window_bounds = array<i64: 8, 128>}]} {
    %0 = tpu.iota {dimensions = array<i32: 1>} : vector<8x40xi32>
    %c0 = arith.constant 0 : index
    %c0_0 = arith.constant 0 : index
    %1 = vector.load %arg1[%c0, %c0_0] : memref<8x4xi32, #tpu.memory_space<vmem>>, vector<8x4xi32>
    %2 = vector.extract_strided_slice %1 {offsets = [0, 0], sizes = [8, 1], strides = [1, 1]} : vector<8x4xi32> to vector<8x1xi32>
    %3 = vector.broadcast %2 : vector<8x1xi32> to vector<8x40xi32>
    %4 = arith.cmpi eq, %0, %3 : vector<8x40xi32>
    %5 = vector.extract_strided_slice %1 {offsets = [0, 1], sizes = [8, 1], strides = [1, 1]} : vector<8x4xi32> to vector<8x1xi32>
    %6 = vector.broadcast %5 : vector<8x1xi32> to vector<8x40xi32>
    %7 = arith.cmpi eq, %0, %6 : vector<8x40xi32>
    %8 = arith.ori %4, %7 : vector<8x40xi1>
    %9 = vector.extract_strided_slice %1 {offsets = [0, 2], sizes = [8, 1], strides = [1, 1]} : vector<8x4xi32> to vector<8x1xi32>
    %10 = vector.broadcast %9 : vector<8x1xi32> to vector<8x40xi32>
    %11 = arith.cmpi eq, %0, %10 : vector<8x40xi32>
    %12 = arith.ori %8, %11 : vector<8x40xi1>
    %13 = vector.extract_strided_slice %1 {offsets = [0, 3], sizes = [8, 1], strides = [1, 1]} : vector<8x4xi32> to vector<8x1xi32>
    %14 = vector.broadcast %13 : vector<8x1xi32> to vector<8x40xi32>
    %15 = arith.cmpi eq, %0, %14 : vector<8x40xi32>
    %16 = arith.ori %12, %15 : vector<8x40xi1>
    %17 = arith.extui %16 : vector<8x40xi1> to vector<8x40xi32>
    %18 = arith.sitofp %17 : vector<8x40xi32> to vector<8x40xf32>
    %c0_1 = arith.constant 0 : index
    %c0_2 = arith.constant 0 : index
    %19 = vector.load %arg3[%c0_1, %c0_2] : memref<40x128xf32, #tpu.memory_space<vmem>>, vector<40x128xf32>
    %cst = arith.constant dense<0.000000e+00> : vector<8x128xf32>
    %20 = tpu.matmul %18, %19, %cst {dimension_numbers = #tpu.dot_dimension_numbers<[1], [0], [0], [1], [0, 0, 1, 1], [], []>} : vector<8x40xf32>, vector<40x128xf32>, vector<8x128xf32> -> vector<8x128xf32>
    %c0_3 = arith.constant 0 : index
    %c0_4 = arith.constant 0 : index
    %21 = vector.load %arg2[%c0_3, %c0_4] : memref<8x4xi32, #tpu.memory_space<vmem>>, vector<8x4xi32>
    %22 = vector.extract_strided_slice %21 {offsets = [0, 0], sizes = [8, 1], strides = [1, 1]} : vector<8x4xi32> to vector<8x1xi32>
    %23 = vector.broadcast %22 : vector<8x1xi32> to vector<8x40xi32>
    %24 = arith.cmpi eq, %0, %23 : vector<8x40xi32>
    %25 = vector.extract_strided_slice %21 {offsets = [0, 1], sizes = [8, 1], strides = [1, 1]} : vector<8x4xi32> to vector<8x1xi32>
    %26 = vector.broadcast %25 : vector<8x1xi32> to vector<8x40xi32>
    %27 = arith.cmpi eq, %0, %26 : vector<8x40xi32>
    %28 = arith.ori %24, %27 : vector<8x40xi1>
    %29 = vector.extract_strided_slice %21 {offsets = [0, 2], sizes = [8, 1], strides = [1, 1]} : vector<8x4xi32> to vector<8x1xi32>
    %30 = vector.broadcast %29 : vector<8x1xi32> to vector<8x40xi32>
    %31 = arith.cmpi eq, %0, %30 : vector<8x40xi32>
    %32 = arith.ori %28, %31 : vector<8x40xi1>
    %33 = vector.extract_strided_slice %21 {offsets = [0, 3], sizes = [8, 1], strides = [1, 1]} : vector<8x4xi32> to vector<8x1xi32>
    %34 = vector.broadcast %33 : vector<8x1xi32> to vector<8x40xi32>
    %35 = arith.cmpi eq, %0, %34 : vector<8x40xi32>
    %36 = arith.ori %32, %35 : vector<8x40xi1>
    %37 = arith.extui %36 : vector<8x40xi1> to vector<8x40xi32>
    %38 = arith.sitofp %37 : vector<8x40xi32> to vector<8x40xf32>
    %c0_5 = arith.constant 0 : index
    %c0_6 = arith.constant 0 : index
    %39 = vector.load %arg4[%c0_5, %c0_6] : memref<40x128xf32, #tpu.memory_space<vmem>>, vector<40x128xf32>
    %cst_7 = arith.constant dense<0.000000e+00> : vector<8x128xf32>
    %40 = tpu.matmul %38, %39, %cst_7 {dimension_numbers = #tpu.dot_dimension_numbers<[1], [0], [0], [1], [0, 0, 1, 1], [], []>} : vector<8x40xf32>, vector<40x128xf32>, vector<8x128xf32> -> vector<8x128xf32>
    %41 = arith.mulf %20, %40 : vector<8x128xf32>
    %c0_8 = arith.constant 0 : index
    %c0_9 = arith.constant 0 : index
    %42 = vector.load %arg5[%c0_8, %c0_9] : memref<128x128xf32, #tpu.memory_space<vmem>>, vector<128x128xf32>
    %cst_10 = arith.constant dense<0.000000e+00> : vector<8x128xf32>
    %43 = tpu.matmul %41, %42, %cst_10 {dimension_numbers = #tpu.dot_dimension_numbers<[1], [0], [0], [1], [0, 0, 1, 1], [], []>} : vector<8x128xf32>, vector<128x128xf32>, vector<8x128xf32> -> vector<8x128xf32>
    %c0_11 = arith.constant 0 : index
    %c0_12 = arith.constant 0 : index
    %44 = vector.load %arg6[%c0_11, %c0_12] : memref<1x128xf32, #tpu.memory_space<vmem>>, vector<1x128xf32>
    %45 = vector.broadcast %44 : vector<1x128xf32> to vector<8x128xf32>
    %46 = arith.addf %43, %45 : vector<8x128xf32>
    %47 = math.tanh %46 : vector<8x128xf32>
    %c0_13 = arith.constant 0 : index
    %c0_14 = arith.constant 0 : index
    %48 = vector.load %arg7[%c0_13, %c0_14] : memref<8x128xf32, #tpu.memory_space<vmem>>, vector<8x128xf32>
    tpu.vector_store %arg7[%c0_13, %c0_14], %47 {strides = array<i32>} : memref<8x128xf32, #tpu.memory_space<vmem>>, vector<8x128xf32>,
    return
  }
  func.func @transform_0(%arg0: i32) -> (i32, i32) {
    %c0_i32 = arith.constant 0 : i32
    %c0_i32_0 = arith.constant 0 : i32
    return %arg0, %c0_i32 : i32, i32
  }
  func.func @transform_1(%arg0: i32) -> (i32, i32) {
    %c0_i32 = arith.constant 0 : i32
    %c0_i32_0 = arith.constant 0 : i32
    return %arg0, %c0_i32 : i32, i32
  }
  func.func @transform_2(%arg0: i32) -> (i32, i32) {
    %c0_i32 = arith.constant 0 : i32
    %c0_i32_0 = arith.constant 0 : i32
    %c0_i32_1 = arith.constant 0 : i32
    return %c0_i32, %c0_i32_0 : i32, i32
  }
  func.func @transform_3(%arg0: i32) -> (i32, i32) {
    %c0_i32 = arith.constant 0 : i32
    %c0_i32_0 = arith.constant 0 : i32
    %c0_i32_1 = arith.constant 0 : i32
    return %c0_i32, %c0_i32_0 : i32, i32
  }
  func.func @transform_4(%arg0: i32) -> (i32, i32) {
    %c0_i32 = arith.constant 0 : i32
    %c0_i32_0 = arith.constant 0 : i32
    %c0_i32_1 = arith.constant 0 : i32
    return %c0_i32, %c0_i32_0 : i32, i32
  }
  func.func @transform_5(%arg0: i32) -> (i32, i32) {
    %c0_i32 = arith.constant 0 : i32
    %c0_i32_0 = arith.constant 0 : i32
    %c0_i32_1 = arith.constant 0 : i32
    return %c0_i32, %c0_i32_0 : i32, i32
  }
  func.func @transform_6(%arg0: i32) -> (i32, i32) {
    %c0_i32 = arith.constant 0 : i32
    %c0_i32_0 = arith.constant 0 : i32
    return %arg0, %c0_i32 : i32, i32
  }
}

</mosaic_0001>

<bundles_post_ra>
// kernel: mlp_context_encoder.1
= control target key start
LH: loop header
LB: loop body
LE: loop exit
PB: predicated region body
PF: predicated region fallthrough
CT: control target
= control target key end

     0   :  { %v509_v1 = vmov 2   ;;  %v510_v2 = vmov 0   ;;  %s675_s0 = inlined_call_operand.vmem [shape: s32[8,4], index: 0, kind: input, shape index: {}]   ;;  %s676_s1 = inlined_call_operand.vmem [shape: s32[8,4], index: 1, kind: input, shape index: {}]   ;;  %s677_s2 = inlined_call_operand.vmem [shape: f32[40,128], index: 2, kind: input, shape index: {}]   ;;  %s678_s3 = inlined_call_operand.vmem [shape: f32[40,128], index: 3, kind: input, shape index: {}]   ;;  %s679_s4 = inlined_call_operand.vmem [shape: f32[128,128], index: 4, kind: input, shape index: {}]   ;;  %s680_s5 = inlined_call_operand.vmem [shape: f32[1,128], index: 5, kind: input, shape index: {}]   ;;  %s681_s6 = inlined_call_operand.hbm [shape: f32[8,128], index: 6, kind: output, shape index: {}]  }
   0x1   :  { %v26_v0 = vld [vmem:[%s675_s0] sm:$0xff]  ;;  %478 = vset.pattern.permute.xlu1 %v509_v1  ;;  %476 = vset.pattern.permute.xlu0 %v510_v2  ;;  %v49_v4 = vld [vmem:[%s677_s2 + $0x8] sm:$0xff] }
   0x2   :  { %v48_v3 = vld [vmem:[%s677_s2] sm:$0xff] }
   0x3   :  { %11 = vsyncpa [#allocation3], 0  ;;  %37 = vperm.xlu1 %478, %v26_v0   ;;  %28 = vperm.xlu0 %476, %v26_v0   ;;  %v433_v5 = vpack.c.bf16 %v49_v4, %v48_v3  ;;  %v50_v6 = vld [vmem:[%s677_s2 + $0x10] sm:$0xff]  ;;  %v51_v7 = vld [vmem:[%s677_s2 + $0x18] sm:$0xff]  ;;  %v511_v8 = vmov 0.0|0.0   ;;  %v512_v10 = vmov 3   ;;  %v24_v30 = vlaneseq }
   0x4   :  { %432 = vmatprep.subr.bf16.mxu1 %v511_v8  ;;  %444 = vmatprep.subr.bf16.mxu0 %v511_v8  ;;  %v436_v9 = vpack.c.bf16 %v51_v7, %v50_v6  ;;  %v513_v11 = vmov 1   ;;  %v127_v12 = vld [vmem:[%s676_s1] sm:$0xff]  ;;  %v514_v13 = vmov 0.0   ;;  %vm515_vm0 = vmmov 0   ;;  %v229_v16 = vld [vmem:[%s679_s4 + $0x8] sm:$0xff]  ;;  %v230_v17 = vld [vmem:[%s679_s4 + $0x10] sm:$0xff] }
   0x5   :  { %434 = vmatpush3.bf16.msra.mxu1 %v433_v5  ;;  %v52_v14 = vld [vmem:[%s677_s2 + $0x20] sm:$0xff]  ;;  %381 = vmatprep.mubr.msk.f32.mxu1 %vm515_vm0, %v514_v13  ;;  %v231_v19 = vld [vmem:[%s679_s4 + $0x18] sm:$0xff]  ;;  %v233_v22 = vld [vmem:[%s679_s4 + $0x28] sm:$0xff]  ;;  %v25_v33 = vand.u32 127, %v24_v30  ;;  %vm53_vm7 = vcmask 326656   ;;  %s516_s24 = smov [#allocation2]  }
   0x6   :  { %435 = vmatprep.subr.bf16.mxu1 %v511_v8  ;;  %429 = vmatprep.mubr.msk.f32.mxu0 %vm515_vm0, %v514_v13  ;;  %v228_v15 = vld [vmem:[%s679_s4] sm:$0xff]  ;;  %v448_v20 = vpack.c.bf16 %v231_v19, %v230_v17  ;;  %v234_v24 = vld [vmem:[%s679_s4 + $0x30] sm:$0xff]  ;;  %v235_v25 = vld [vmem:[%s679_s4 + $0x38] sm:$0xff]  ;;  %s329_s25 = sshll.u32 %s516_s24, 4  ;;  %s330_s25 = int_to_ptr.vmem [resolvable:$true] %s329_s25 }
   0x7   :  { %479 = vset.pattern.permute.xlu1 %v512_v10  ;;  %477 = vset.pattern.permute.xlu0 %v513_v11  ;;  %v445_v18 = vpack.c.bf16 %v229_v16, %v228_v15  ;;  %v232_v21 = vld [vmem:[%s679_s4 + $0x20] sm:$0xff]  ;;  %v454_v26 = vpack.c.bf16 %v235_v25, %v234_v24  ;;  %v237_v28 = vld [vmem:[%s679_s4 + $0x48] sm:$0xff]  ;;  %v151_v39 = vld [vmem:[%s678_s3 + $0x10] sm:$0xff]  ;;  %p490_p1 = scmp.lt.s32.totalorder %s330_s25, %s330_s25 }
   0x8   :  { %42 = vperm.xlu1 %479, %v26_v0   ;;  %32 = vperm.xlu0 %477, %v26_v0   ;;  %v451_v23 = vpack.c.bf16 %v233_v22, %v232_v21  ;;  %v236_v27 = vld [vmem:[%s679_s4 + $0x40] sm:$0xff]  ;;  %v150_v37 = vld [vmem:[%s678_s3 + $0x8] sm:$0xff]  ;;  %v152_v40 = vld [vmem:[%s678_s3 + $0x18] sm:$0xff] }
   0x9   :  { %437 = vmatpush3.bf16.msra.mxu1 %v436_v9  ;;  %446 = vmatpush3.bf16.msra.mxu0 %v445_v18  ;;  %v457_v29 = vpack.c.bf16 %v237_v28, %v236_v27  ;;  %v149_v36 = vld [vmem:[%s678_s3] sm:$0xff]  ;;  %v442_v44 = vpack.c.bf16 %v152_v40, %v151_v39  ;;  %v238_v49 = vld [vmem:[%s679_s4 + $0x50] sm:$0xff]  ;;  %v239_v50 = vld [vmem:[%s679_s4 + $0x58] sm:$0xff] }
   0xa   :  { %379 = vmatprep.subr.mxu1 %v514_v13  ;;  %447 = vmatprep.subr.bf16.mxu0 %v511_v8  ;;  %v439_v38 = vpack.c.bf16 %v150_v37, %v149_v36  ;;  %v153_v47 = vld [vmem:[%s678_s3 + $0x20] sm:$0xff]  ;;  %v460_v51 = vpack.c.bf16 %v239_v50, %v238_v49  ;;  %v241_v53 = vld [vmem:[%s679_s4 + $0x68] sm:$0xff]  ;;  %v242_v55 = vld [vmem:[%s679_s4 + $0x70] sm:$0xff] }
   0xb   :  { %v240_v52 = vld [vmem:[%s679_s4 + $0x60] sm:$0xff]  ;;  %v243_v56 = vld [vmem:[%s679_s4 + $0x78] sm:$0xff]  ;;  %s485_s4 = scalar_lea.vmem %s330_s25, 128 }
   0xc   :  { %480 = vset.pattern.permute.xlu1 %v510_v2  ;;  %133 = vperm.xlu0 %477, %v127_v12   ;;  %v463_v54 = vpack.c.bf16 %v241_v53, %v240_v52  ;;  %v466_v57 = vpack.c.bf16 %v243_v56, %v242_v55  ;;  %v341_v63 = vld [vmem:[%s680_s5] ss:$0 sm:$0xff]  ;;  %p486_p0 = scmp.ne.s32.totalorder %s330_s25, %s485_s4  ;;  %p491_p2 = scmp.lt.s32.totalorder %s485_s4, %s485_s4 }
   0xd   :  { %129 = vperm.xlu1 %480, %v127_v12   ;;  %380 = vmatpush3.msra.mxu1 %v52_v14 }
   0xe   :  { %438 = vmatprep.subr.bf16.mxu1 %v511_v8  ;;  %449 = vmatpush3.bf16.msra.mxu0 %v448_v20  ;;  %p492_p3 = por %p491_p2, %p490_p1 }
   0xf   :  { %450 = vmatprep.subr.bf16.mxu0 %v511_v8 }
  0x10   :  { %482 = vset.pattern.permute.xlu0 %v512_v10  ;;  %p493_p4 = pnand %p492_p3, %p486_p0 }
  0x11   :  { %481 = vset.pattern.permute.xlu1 %v509_v1  ;;  %143 = vperm.xlu0 %482, %v127_v12  }
  0x12   :  { %138 = vperm.xlu1 %481, %v127_v12   ;;  %452 = vmatpush3.bf16.msra.mxu0 %v451_v23 }
  0x13   :  { %453 = vmatprep.subr.bf16.mxu0 %v511_v8 }
  0x16   :  { %455 = vmatpush3.bf16.msra.mxu0 %v454_v26 }
  0x17   :  { %456 = vmatprep.subr.bf16.mxu0 %v511_v8 }
  0x1a   :  { %458 = vmatpush3.bf16.msra.mxu0 %v457_v29 }
  0x1b   :  { %459 = vmatprep.subr.bf16.mxu0 %v511_v8 }
  0x1e   :  { %461 = vmatpush3.bf16.msra.mxu0 %v460_v51 }
  0x1f   :  { %462 = vmatprep.subr.bf16.mxu0 %v511_v8 }
  0x22   :  { %464 = vmatpush3.bf16.msra.mxu0 %v463_v54 }
  0x23   :  { %465 = vmatprep.subr.bf16.mxu0 %v511_v8 }
  0x26   :  { %467 = vmatpush3.bf16.msra.mxu0 %v466_v57 }
  0x82   :  { %v38_v31 = vpop.permute.xlu1 %37  ;;  %v29_v32 = vpop.permute.xlu0 %28 }
  0x83   :  { %vm30_vm1 = vcmp.eq.s32.totalorder %v25_v33, %v29_v32  ;;  %vm39_vm3 = vcmp.eq.s32.totalorder %v25_v33, %v38_v31 }
  0x87   :  { %v43_v34 = vpop.permute.xlu1 %42  ;;  %v33_v35 = vpop.permute.xlu0 %32 }
  0x88   :  { %vm34_vm2 = vcmp.eq.s32.totalorder %v25_v33, %v33_v35  ;;  %vm44_vm5 = vcmp.eq.s32.totalorder %v25_v33, %v43_v34 }
  0x89   :  { %vm35_vm4 = vmor %vm30_vm1, %vm34_vm2 }
  0x8a   :  { %vm40_vm6 = vmor %vm35_vm4, %vm39_vm3 }
  0x8b   :  { %vm45_vm8 = vmor %vm40_vm6, %vm44_vm5  ;;  %v134_v41 = vpop.permute.xlu0 %133 }
  0x8c   :  { %v130_v42 = vpop.permute.xlu1 %129  ;;  %v337_v43 = vsel %vm45_vm8, 1.0, %v514_v13  ;;  %vm135_vm9 = vcmp.eq.s32.totalorder %v25_v33, %v134_v41 }
  0x8d   :  { %382 = vmatmul.mubr.msk.f32.vlgmr.msra.gmra.mrb[0].mxu1 %vm53_vm7, %v337_v43  ;;  %vm131_vm10 = vcmp.eq.s32.totalorder %v25_v33, %v130_v42 }
  0x8e   :  { %440 = vmatpush3.bf16.msra.mxu1 %v439_v38  ;;  %394 = vmatprep.mubr.msk.f32.mxu1 %vm515_vm0, %v514_v13  ;;  %vm136_vm12 = vmor %vm131_vm10, %vm135_vm9 }
  0x8f   :  { %441 = vmatprep.subr.bf16.mxu1 %v511_v8 }
  0x90   :  { %v144_v45 = vpop.permute.xlu0 %143 }
  0x91   :  { %v139_v46 = vpop.permute.xlu1 %138  ;;  %vm145_vm11 = vcmp.eq.s32.totalorder %v25_v33, %v144_v45 }
  0x92   :  { %vm140_vm13 = vcmp.eq.s32.totalorder %v25_v33, %v139_v46  ;;  %443 = vmatpush3.bf16.msra.mxu1 %v442_v44 }
  0x93   :  { %vm141_vm14 = vmor %vm136_vm12, %vm140_vm13  ;;  %392 = vmatprep.subr.mxu1 %v514_v13 }
  0x94   :  { %vm146_vm15 = vmor %vm141_vm14, %vm145_vm11 }
  0x95   :  { %v339_v48 = vsel %vm146_vm15, 1.0, %v514_v13 }
  0x96   :  { %393 = vmatpush3.msra.mxu1 %v153_v47 }
  0x97   :  { %395 = vmatmul.mubr.msk.f32.vlgmr.msra.gmra.mrb[2].mxu1 %vm53_vm7, %v339_v48 }
 0x160   :  { %v123_v58 = vpop.f32.mrb[0].mxu1 }
 0x161   :  { %v383_v59 = vpop.f32.mrb[1].mxu1 }
 0x16a   :  { %v223_v60 = vpop.f32.mrb[2].mxu1 }
 0x16b   :  { %v227_v61 = vmul.f32 %v223_v60, %v123_v58  ;;  %v396_v62 = vpop.f32.mrb[3].mxu1 }
 0x16d   :  { %430 = vmatmul.mubr.f32.vlgmr.msra.gmra.mrb[0].mxu0 %v227_v61 }
 0x240   :  { %v317_v0 = vpop.f32.mrb[0].mxu0 }
 0x241   :  { %v318_v1 = vadd.f32 %v341_v63, %v317_v0  ;;  %v431_v2 = vpop.f32.mrb[1].mxu0 }
 0x243   :  { %483 = vtanh.f32 %v318_v1 }
 0x24d   :  { %v484_v3 = vpop.eup %483 }
 0x24e   :  { %322 = vst [vmem:[#allocation2] sm:$0xff] %v484_v3 }
 0x24f   :  { %496 = shalt.err (!%p493_p4)
}
 0x250   :  { %s497_s5 = scalar_lea.hbm %s681_s6, 128 }
 0x251   :  { %p498_p5 = scmp.ne.s32.totalorder %s681_s6, %s497_s5  ;;  %p501_p6 = scmp.lt.u32.totalorder %s497_s5, %s681_s6 }
 0x253   :  { %p503_p7 = pnand %p501_p6, %p498_p5 }
 0x255   :  { %506 = shalt.err (!%p503_p7)
}
 0x256   :  { %332 = dma.vmem_to_hbm [thread:$0]  %s330_s25, 128, %s681_s6, [#allocation3]  }
 0x257   :  { %507 = dma.done.wait [#allocation3], 128  }
 0x258   :  { %508 = vsyncadd [#allocation3], 4294967168 }
 0x259   :  { %336 = vsyncpa [#allocation3], 1 }

</bundles_post_ra>
